<compile_context>
chip_gen: v7x
topology: tpu7x:2x2x1
jax: 0.10.0
libtpu: 0.0.40
codegen_flags: <defaults>
</compile_context>

<pallas_src>
import functools

import jax
import jax.numpy as jnp
from jax.experimental import pallas as pl
from jax.experimental.pallas import tpu as pltpu


def _pick_h_tile(H, W, itemsize, vmem_budget_bytes=16 * 1024 * 1024):
    """Largest H-tile (multiple of 8 dividing H, or full H) whose per-step
    double-buffered VMEM footprint fits in the budget."""
    const_bytes = 2 * 2 * (W * 2 * W) * 4            # cp + cm, double-buffered f32

    def fits(ht):
        in_bytes = 4 * 2 * ht * W * itemsize         # 4 subband blocks, 2 buffers
        out_bytes = 2 * ht * 4 * W * itemsize        # (Ht, 4W) output, 2 buffers
        return in_bytes + out_bytes + const_bytes <= vmem_budget_bytes

    if H % 8 != 0 or fits(H):
        return H
    best = 8
    ht = 8
    while ht < H:
        if H % ht == 0 and fits(ht):
            best = ht
        ht += 8
    return best


def _idwt_kernel(ll_ref, lh_ref, hl_ref, hh_ref, s_ref, cp_ref, cm_ref, out_ref,
                 *, num_c, two_w):
    b = pl.program_id(0)
    c = pl.program_id(1)

    # Per-(b, output-channel) modulation scales (0.5 IDWT factor pre-folded),
    # stored flat as [..., ll, lh, hl, hh, ...] in SMEM.
    base = (b * num_c + c) * 4
    m_ll = s_ref[base]
    m_lh = s_ref[base + 1]
    m_hl = s_ref[base + 2]
    m_hh = s_ref[base + 3]

    f32 = jnp.float32
    ll = ll_ref[0, 0].astype(f32) * m_ll          # (Ht, W)
    lh = lh_ref[0, 0].astype(f32) * m_lh
    hl = hl_ref[0, 0].astype(f32) * m_hl
    hh = hh_ref[0, 0].astype(f32) * m_hh

    # Row butterfly: even output rows use (ll+lh, hl+hh), odd rows use (ll-lh, hl-hh).
    p = ll + lh
    q = ll - lh
    u = hl + hh
    v = hl - hh

    # Column synthesis / width interleave as constant matmuls (idle MXU):
    #   cp[j, 2j] = cp[j, 2j+1] = 1 ;  cm[j, 2j] = +1, cm[j, 2j+1] = -1
    cp = cp_ref[...]                              # (W, 2W)
    cm = cm_ref[...]                              # (W, 2W)
    even = (jnp.dot(p, cp, preferred_element_type=f32)
            + jnp.dot(u, cm, preferred_element_type=f32))      # (Ht, 2W)
    odd = (jnp.dot(q, cp, preferred_element_type=f32)
           + jnp.dot(v, cm, preferred_element_type=f32))       # (Ht, 2W)

    # Output block is (1, 1, Ht, 4W) = [even row | odd row]; the wrapper's final
    # reshape to (..., 2H, 2W) is free (identical row-major layout).
    out_ref[0, 0, :, :two_w] = even.astype(out_ref.dtype)
    out_ref[0, 0, :, two_w:] = odd.astype(out_ref.dtype)


def idwt_upsample(x, style, weight, bias, *, h_tile=None):
    """x: (B, C_in, H, W), style: (B, S), weight: (C_in, S), bias: (C_in,).

    Returns (B, C_in // 4, 2H, 2W), matching IDWTUpsaplme.forward.
    """
    B, Cin, H, W = x.shape
    C = Cin // 4
    assert C * 4 == Cin

    f32 = jnp.float32

    # --- hoisted modulation (tiny (B,S)x(S,Cin) matmul), 0.5 IDWT factor folded in ---
    scale = (style.astype(f32) @ weight.astype(f32).T + bias.astype(f32)) * 0.5   # (B, Cin)
    s4 = jnp.concatenate(
        [scale[:, :C, None], scale[:, C:].reshape(B, C, 3)], axis=2)              # (B, C, 4)
    s_flat = s4.reshape(B * C * 4)                                                 # -> SMEM (1-D, no padding blowup)

    # --- constant Haar column-synthesis matrices (W, 2W) ---
    j = jnp.arange(W, dtype=jnp.int32)[:, None]
    k = jnp.arange(2 * W, dtype=jnp.int32)[None, :]
    hit = (k // 2) == j
    cp = hit.astype(f32)                               # places column j at 2j and 2j+1
    cm = (hit * (1 - 2 * (k % 2))).astype(f32)         # +1 at 2j, -1 at 2j+1

    itemsize = jnp.dtype(x.dtype).itemsize
    Ht = _pick_h_tile(H, W, itemsize) if h_tile is None else h_tile
    assert H % Ht == 0
    nH = H // Ht
    two_w = 2 * W
    four_w = 4 * W

    kernel = functools.partial(_idwt_kernel, num_c=C, two_w=two_w)

    # Advisory cost estimate for XLA scheduling around the custom call.
    total = B * C * H * W
    cost = pl.CostEstimate(
        flops=16 * total * W + 12 * total,
        transcendentals=0,
        bytes_accessed=(B * Cin * H * W + B * C * H * four_w) * itemsize,
    )

    out_packed = pl.pallas_call(
        kernel,
        out_shape=jax.ShapeDtypeStruct((B, C, H, four_w), x.dtype),
        grid=(B, C, nH),
        in_specs=[
            # Four views of the same x, one per subband (channel layout:
            # LL = c, LH/HL/HH = C + 3*c + {0,1,2}).
            pl.BlockSpec((1, 1, Ht, W), lambda b, c, h: (b, c, h, 0)),
            pl.BlockSpec((1, 1, Ht, W), lambda b, c, h: (b, C + 3 * c, h, 0)),
            pl.BlockSpec((1, 1, Ht, W), lambda b, c, h: (b, C + 3 * c + 1, h, 0)),
            pl.BlockSpec((1, 1, Ht, W), lambda b, c, h: (b, C + 3 * c + 2, h, 0)),
            # Per-(b, c) scales as scalars in SMEM.
            pl.BlockSpec(memory_space=pltpu.MemorySpace.SMEM),
            # Constant synthesis matrices (block index never changes -> fetched once).
            pl.BlockSpec((W, two_w), lambda b, c, h: (0, 0)),
            pl.BlockSpec((W, two_w), lambda b, c, h: (0, 0)),
        ],
        out_specs=pl.BlockSpec((1, 1, Ht, four_w), lambda b, c, h: (b, c, h, 0)),
        compiler_params=pltpu.CompilerParams(
            dimension_semantics=("parallel", "parallel", "parallel"),
            vmem_limit_bytes=32 * 1024 * 1024,
        ),
        cost_estimate=cost,
    )(x, x, x, x, s_flat, cp, cm)

    # Free reshape: (B, C, H, [even|odd] each 2W) -> (B, C, 2H, 2W).
    return out_packed.reshape(B, C, 2 * H, 2 * W)


def _reference(x, style, weight, bias):
    B, Cin, H, W = x.shape
    C = Cin // 4
    scale = style @ weight.T + bias
    xm = x * scale[:, :, None, None]
    ll = xm[:, :C]
    high = xm[:, C:].reshape(B, C, 3, H, W)
    lh, hl, hh = high[:, :, 0], high[:, :, 1], high[:, :, 2]
    out = jnp.zeros((B, C, 2 * H, 2 * W), jnp.float32)
    out = out.at[:, :, 0::2, 0::2].set(0.5 * (ll + lh + hl + hh))
    out = out.at[:, :, 0::2, 1::2].set(0.5 * (ll + lh - hl - hh))
    out = out.at[:, :, 1::2, 0::2].set(0.5 * (ll - lh + hl - hh))
    out = out.at[:, :, 1::2, 1::2].set(0.5 * (ll - lh - hl + hh))
    return out


if __name__ == "__main__":
    # Module config (synthetic, deterministic init).
    B, Cin, H, W = 2, 16, 16, 16          # channels_in = 16 -> output channels = 4
    S = 32                                # style_dim

    key = jax.random.PRNGKey(0)
    kx, ks, kw = jax.random.split(key, 3)
    x = jax.random.normal(kx, (B, Cin, H, W), dtype=jnp.float32)
    style = jax.random.normal(ks, (B, S), dtype=jnp.float32)
    weight = 0.1 * jax.random.normal(kw, (Cin, S), dtype=jnp.float32)  # nn.Linear weight
    bias = jnp.ones((Cin,), dtype=jnp.float32)                         # bias.data.fill_(1.0)

    out = jax.jit(idwt_upsample)(x, style, weight, bias)
    out = jax.block_until_ready(out)

    ref = _reference(x, style, weight, bias)
    assert out.shape == (B, Cin // 4, 2 * H, 2 * W)
    assert jnp.allclose(out, ref, atol=1e-5, rtol=1e-5)

    print("KERNEL_OK")
</pallas_src>

<mosaic_0001>
module attributes {stable_mosaic.version = 11 : i64} {
  func.func @_idwt_kernel(%arg0: i32, %arg1: i32, %arg2: i32, %arg3: memref<1x1x16x16xf32, #tpu.memory_space<vmem>>, %arg4: memref<1x1x16x16xf32, #tpu.memory_space<vmem>>, %arg5: memref<1x1x16x16xf32, #tpu.memory_space<vmem>>, %arg6: memref<1x1x16x16xf32, #tpu.memory_space<vmem>>, %arg7: memref<32xf32, #tpu.memory_space<smem>>, %arg8: memref<16x32xf32, #tpu.memory_space<vmem>>, %arg9: memref<16x32xf32, #tpu.memory_space<vmem>>, %arg10: memref<1x1x16x64xf32, #tpu.memory_space<vmem>>) attributes {dimension_semantics = [#tpu.dimension_semantics<parallel>, #tpu.dimension_semantics<parallel>, #tpu.dimension_semantics<parallel>], iteration_bounds = array<i64: 2, 4, 1>, scalar_prefetch = 0 : i64, scratch_operands = 0 : i64, tpu.core_type = #tpu.core_type<tc>, window_params = [{transform_indices = @transform_0, window_bounds = array<i64: 1, 1, 16, 16>}, {transform_indices = @transform_1, window_bounds = array<i64: 1, 1, 16, 16>}, {transform_indices = @transform_2, window_bounds = array<i64: 1, 1, 16, 16>}, {transform_indices = @transform_3, window_bounds = array<i64: 1, 1, 16, 16>}, {transform_indices = @transform_4, window_bounds = array<i64: 32>}, {pipeline_mode = #tpu.pipeline_mode<synchronous>, transform_indices = @transform_5, window_bounds = array<i64: 16, 32>}, {pipeline_mode = #tpu.pipeline_mode<synchronous>, transform_indices = @transform_6, window_bounds = array<i64: 16, 32>}, {transform_indices = @transform_7, window_bounds = array<i64: 1, 1, 16, 64>}]} {
    %c4_i32 = arith.constant 4 : i32
    %0 = arith.muli %arg0, %c4_i32 : i32
    %1 = arith.addi %0, %arg1 : i32
    %c4_i32_0 = arith.constant 4 : i32
    %2 = arith.muli %1, %c4_i32_0 : i32
    %3 = arith.index_cast %2 : i32 to index
    %4 = memref.load %arg7[%3] : memref<32xf32, #tpu.memory_space<smem>>
    %c1_i32 = arith.constant 1 : i32
    %5 = arith.addi %2, %c1_i32 : i32
    %6 = arith.index_cast %5 : i32 to index
    %7 = memref.load %arg7[%6] : memref<32xf32, #tpu.memory_space<smem>>
    %c2_i32 = arith.constant 2 : i32
    %8 = arith.addi %2, %c2_i32 : i32
    %9 = arith.index_cast %8 : i32 to index
    %10 = memref.load %arg7[%9] : memref<32xf32, #tpu.memory_space<smem>>
    %c3_i32 = arith.constant 3 : i32
    %11 = arith.addi %2, %c3_i32 : i32
    %12 = arith.index_cast %11 : i32 to index
    %13 = memref.load %arg7[%12] : memref<32xf32, #tpu.memory_space<smem>>
    %c0 = arith.constant 0 : index
    %c0_1 = arith.constant 0 : index
    %c0_2 = arith.constant 0 : index
    %c0_3 = arith.constant 0 : index
    %14 = vector.load %arg3[%c0, %c0_1, %c0_2, %c0_3] : memref<1x1x16x16xf32, #tpu.memory_space<vmem>>, vector<1x1x16x16xf32>
    %15 = vector.shape_cast %14 : vector<1x1x16x16xf32> to vector<16x16xf32>
    %16 = vector.broadcast %4 : f32 to vector<16x16xf32>
    %17 = arith.mulf %15, %16 : vector<16x16xf32>
    %c0_4 = arith.constant 0 : index
    %c0_5 = arith.constant 0 : index
    %c0_6 = arith.constant 0 : index
    %c0_7 = arith.constant 0 : index
    %18 = vector.load %arg4[%c0_4, %c0_5, %c0_6, %c0_7] : memref<1x1x16x16xf32, #tpu.memory_space<vmem>>, vector<1x1x16x16xf32>
    %19 = vector.shape_cast %18 : vector<1x1x16x16xf32> to vector<16x16xf32>
    %20 = vector.broadcast %7 : f32 to vector<16x16xf32>
    %21 = arith.mulf %19, %20 : vector<16x16xf32>
    %c0_8 = arith.constant 0 : index
    %c0_9 = arith.constant 0 : index
    %c0_10 = arith.constant 0 : index
    %c0_11 = arith.constant 0 : index
    %22 = vector.load %arg5[%c0_8, %c0_9, %c0_10, %c0_11] : memref<1x1x16x16xf32, #tpu.memory_space<vmem>>, vector<1x1x16x16xf32>
    %23 = vector.shape_cast %22 : vector<1x1x16x16xf32> to vector<16x16xf32>
    %24 = vector.broadcast %10 : f32 to vector<16x16xf32>
    %25 = arith.mulf %23, %24 : vector<16x16xf32>
    %c0_12 = arith.constant 0 : index
    %c0_13 = arith.constant 0 : index
    %c0_14 = arith.constant 0 : index
    %c0_15 = arith.constant 0 : index
    %26 = vector.load %arg6[%c0_12, %c0_13, %c0_14, %c0_15] : memref<1x1x16x16xf32, #tpu.memory_space<vmem>>, vector<1x1x16x16xf32>
    %27 = vector.shape_cast %26 : vector<1x1x16x16xf32> to vector<16x16xf32>
    %28 = vector.broadcast %13 : f32 to vector<16x16xf32>
    %29 = arith.mulf %27, %28 : vector<16x16xf32>
    %30 = arith.addf %17, %21 : vector<16x16xf32>
    %31 = arith.subf %17, %21 : vector<16x16xf32>
    %32 = arith.addf %25, %29 : vector<16x16xf32>
    %33 = arith.subf %25, %29 : vector<16x16xf32>
    %c0_16 = arith.constant 0 : index
    %c0_17 = arith.constant 0 : index
    %34 = vector.load %arg8[%c0_16, %c0_17] : memref<16x32xf32, #tpu.memory_space<vmem>>, vector<16x32xf32>
    %c0_18 = arith.constant 0 : index
    %c0_19 = arith.constant 0 : index
    %35 = vector.load %arg9[%c0_18, %c0_19] : memref<16x32xf32, #tpu.memory_space<vmem>>, vector<16x32xf32>
    %cst = arith.constant dense<0.000000e+00> : vector<16x32xf32>
    %36 = tpu.matmul %30, %34, %cst {dimension_numbers = #tpu.dot_dimension_numbers<[1], [0], [0], [1], [0, 0, 1, 1], [], []>} : vector<16x16xf32>, vector<16x32xf32>, vector<16x32xf32> -> vector<16x32xf32>
    %cst_20 = arith.constant dense<0.000000e+00> : vector<16x32xf32>
    %37 = tpu.matmul %32, %35, %cst_20 {dimension_numbers = #tpu.dot_dimension_numbers<[1], [0], [0], [1], [0, 0, 1, 1], [], []>} : vector<16x16xf32>, vector<16x32xf32>, vector<16x32xf32> -> vector<16x32xf32>
    %38 = arith.addf %36, %37 : vector<16x32xf32>
    %cst_21 = arith.constant dense<0.000000e+00> : vector<16x32xf32>
    %39 = tpu.matmul %31, %34, %cst_21 {dimension_numbers = #tpu.dot_dimension_numbers<[1], [0], [0], [1], [0, 0, 1, 1], [], []>} : vector<16x16xf32>, vector<16x32xf32>, vector<16x32xf32> -> vector<16x32xf32>
    %cst_22 = arith.constant dense<0.000000e+00> : vector<16x32xf32>
    %40 = tpu.matmul %33, %35, %cst_22 {dimension_numbers = #tpu.dot_dimension_numbers<[1], [0], [0], [1], [0, 0, 1, 1], [], []>} : vector<16x16xf32>, vector<16x32xf32>, vector<16x32xf32> -> vector<16x32xf32>
    %41 = arith.addf %39, %40 : vector<16x32xf32>
    %c0_23 = arith.constant 0 : index
    %c0_24 = arith.constant 0 : index
    %c0_25 = arith.constant 0 : index
    %c0_26 = arith.constant 0 : index
    %42 = vector.load %arg10[%c0_23, %c0_24, %c0_25, %c0_26] : memref<1x1x16x64xf32, #tpu.memory_space<vmem>>, vector<1x1x16x32xf32>
    %43 = vector.shape_cast %42 : vector<1x1x16x32xf32> to vector<16x32xf32>
    %44 = vector.shape_cast %38 : vector<16x32xf32> to vector<1x1x16x32xf32>
    tpu.vector_store %arg10[%c0_23, %c0_24, %c0_25, %c0_26], %44 {strides = array<i32>} : memref<1x1x16x64xf32, #tpu.memory_space<vmem>>, vector<1x1x16x32xf32>,
    %c0_27 = arith.constant 0 : index
    %c0_28 = arith.constant 0 : index
    %c0_29 = arith.constant 0 : index
    %c32 = arith.constant 32 : index
    %45 = vector.load %arg10[%c0_27, %c0_28, %c0_29, %c32] : memref<1x1x16x64xf32, #tpu.memory_space<vmem>>, vector<1x1x16x32xf32>
    %46 = vector.shape_cast %45 : vector<1x1x16x32xf32> to vector<16x32xf32>
    %47 = vector.shape_cast %41 : vector<16x32xf32> to vector<1x1x16x32xf32>
    tpu.vector_store %arg10[%c0_27, %c0_28, %c0_29, %c32], %47 {strides = array<i32>} : memref<1x1x16x64xf32, #tpu.memory_space<vmem>>, vector<1x1x16x32xf32>,
    return
  }
  func.func @transform_0(%arg0: i32, %arg1: i32, %arg2: i32) -> (i32, i32, i32, i32) {
    %c0_i32 = arith.constant 0 : i32
    %c0_i32_0 = arith.constant 0 : i32
    return %arg0, %arg1, %arg2, %c0_i32 : i32, i32, i32, i32
  }
  func.func @transform_1(%arg0: i32, %arg1: i32, %arg2: i32) -> (i32, i32, i32, i32) {
    %c3_i32 = arith.constant 3 : i32
    %0 = arith.muli %c3_i32, %arg1 : i32
    %c4_i32 = arith.constant 4 : i32
    %1 = arith.addi %c4_i32, %0 : i32
    %c0_i32 = arith.constant 0 : i32
    %c0_i32_0 = arith.constant 0 : i32
    return %arg0, %1, %arg2, %c0_i32 : i32, i32, i32, i32
  }
  func.func @transform_2(%arg0: i32, %arg1: i32, %arg2: i32) -> (i32, i32, i32, i32) {
    %c3_i32 = arith.constant 3 : i32
    %0 = arith.muli %c3_i32, %arg1 : i32
    %c4_i32 = arith.constant 4 : i32
    %1 = arith.addi %c4_i32, %0 : i32
    %c1_i32 = arith.constant 1 : i32
    %2 = arith.addi %1, %c1_i32 : i32
    %c0_i32 = arith.constant 0 : i32
    %c0_i32_0 = arith.constant 0 : i32
    return %arg0, %2, %arg2, %c0_i32 : i32, i32, i32, i32
  }
  func.func @transform_3(%arg0: i32, %arg1: i32, %arg2: i32) -> (i32, i32, i32, i32) {
    %c3_i32 = arith.constant 3 : i32
    %0 = arith.muli %c3_i32, %arg1 : i32
    %c4_i32 = arith.constant 4 : i32
    %1 = arith.addi %c4_i32, %0 : i32
    %c2_i32 = arith.constant 2 : i32
    %2 = arith.addi %1, %c2_i32 : i32
    %c0_i32 = arith.constant 0 : i32
    %c0_i32_0 = arith.constant 0 : i32
    return %arg0, %2, %arg2, %c0_i32 : i32, i32, i32, i32
  }
  func.func @transform_4(%arg0: i32, %arg1: i32, %arg2: i32) -> i32 {
    %c0_i32 = arith.constant 0 : i32
    %c0_i32_0 = arith.constant 0 : i32
    return %c0_i32 : i32
  }
  func.func @transform_5(%arg0: i32, %arg1: i32, %arg2: i32) -> (i32, i32) {
    %c0_i32 = arith.constant 0 : i32
    %c0_i32_0 = arith.constant 0 : i32
    %c0_i32_1 = arith.constant 0 : i32
    return %c0_i32, %c0_i32_0 : i32, i32
  }
  func.func @transform_6(%arg0: i32, %arg1: i32, %arg2: i32) -> (i32, i32) {
    %c0_i32 = arith.constant 0 : i32
    %c0_i32_0 = arith.constant 0 : i32
    %c0_i32_1 = arith.constant 0 : i32
    return %c0_i32, %c0_i32_0 : i32, i32
  }
  func.func @transform_7(%arg0: i32, %arg1: i32, %arg2: i32) -> (i32, i32, i32, i32) {
    %c0_i32 = arith.constant 0 : i32
    %c0_i32_0 = arith.constant 0 : i32
    return %arg0, %arg1, %arg2, %c0_i32 : i32, i32, i32, i32
  }
}

</mosaic_0001>

<bundles_post_ra>
// kernel: idwt_upsample.1
= control target key start
LH: loop header
LB: loop body
LE: loop exit
PB: predicated region body
PF: predicated region fallthrough
CT: control target
= control target key end

     0   :  { %s2302_s0 = inlined_call_operand.hbm [shape: f32[2,16,16,16], index: 0, kind: input, shape index: {}, may-alias: {0,1,2,3}]   ;;  %s2303_s1 = inlined_call_operand.hbm [shape: f32[2,16,16,16], index: 1, kind: input, shape index: {}, may-alias: {0,1,2,3}]   ;;  %s2304_s2 = inlined_call_operand.hbm [shape: f32[2,16,16,16], index: 2, kind: input, shape index: {}, may-alias: {0,1,2,3}]   ;;  %s2305_s3 = inlined_call_operand.hbm [shape: f32[2,16,16,16], index: 3, kind: input, shape index: {}, may-alias: {0,1,2,3}]   ;;  %s2306_s4 = inlined_call_operand.vmem [shape: f32[32], index: 4, kind: input, shape index: {}]   ;;  %s2307_s5 = inlined_call_operand.vmem [shape: f32[16,32], index: 5, kind: input, shape index: {}]   ;;  %s2308_s6 = inlined_call_operand.vmem [shape: f32[16,32], index: 6, kind: input, shape index: {}]   ;;  %s2309_s7 = inlined_call_operand.vmem [shape: f32[2,4,16,64], index: 7, kind: output, shape index: {}]  }
   0x1   :  { %2339 = sst [smem:[#allocation31_spill]] %s2302_s0 }
   0x2   :  { %2340 = sst [smem:[#allocation32_spill]] %s2303_s1 }
   0x3   :  { %2341 = sst [smem:[#allocation33_spill]] %s2304_s2 }
   0x4   :  { %2342 = sst [smem:[#allocation34_spill]] %s2305_s3 }
   0x5   :  { %2343 = sst [smem:[#allocation35_spill]] %s2306_s4 }
   0x6   :  { %2344 = sst [smem:[#allocation36_spill]] %s2307_s5 }
   0x7   :  { %2345 = sst [smem:[#allocation37_spill]] %s2308_s6 }
   0x8   :  { %2346 = sst [smem:[#allocation38_spill]] %s2309_s7 }
   0x9   :  { %12 = vsyncpa [#allocation3], 0 }
   0xa   :  { %14 = vsyncpa [#allocation3 + $0x1], 0 }
   0xb   :  { %15 = vsyncpa [#allocation6], 0 }
   0xc   :  { %17 = vsyncpa [#allocation6 + $0x1], 0 }
   0xd   :  { %18 = vsyncpa [#allocation9], 0 }
   0xe   :  { %20 = vsyncpa [#allocation9 + $0x1], 0 }
   0xf   :  { %21 = vsyncpa [#allocation4], 0  ;;  %s1749_s24 = smov 0   ;;  %s1751_s25 = smov 0  }
  0x10   :  { %s1753_s26 = smov 0   ;;  %s1755_s27 = smov 0  }
  0x11   :  { %s1757_s28 = smov 0   ;;  %s1759_s29 = smov 0  }
  0x12   :  { %s1761_s30 = smov 0   ;;  %s1763_s8 = smov 0  }
  0x13   :  { %s1765_s9 = smov 0   ;;  %s1767_s10 = smov 0  }
  0x14   :  { %s1769_s11 = smov 0   ;;  %s1771_s12 = smov 0  }
  0x15   :  { %s1773_s13 = smov 0   ;;  %s1775_s14 = smov 0  }
  0x16   :  { %s1777_s15 = smov 0   ;;  %s1779_s16 = smov 0  }
  0x17   :  { %s1781_s17 = smov 0  }
  0x18 LB: > { %2347 = sst [smem:[#allocation16_spill]] %s1635_s24  ;;  %s42_s18 = sadd.s32 1, %s1691_s15  ;;  %s1699_s17 = sphi %s1781_s17, %s27_s17   ;;  %s1695_s16 = sphi %s1779_s16, %s2428_s16   ;;  %s1691_s15 = sphi %s1777_s15, %s2427_s15   ;;  %s1687_s14 = sphi %s1775_s14, %s2439_s14   ;;  %s1683_s13 = sphi %s1773_s13, %s2425_s13   ;;  %s1679_s12 = sphi %s1771_s12, %s2438_s12   ;;  %s1675_s11 = sphi %s1769_s11, %s2437_s11   ;;  %s1671_s10 = sphi %s1767_s10, %s2436_s10   ;;  %s1667_s9 = sphi %s1765_s9, %s2435_s9   ;;  %s1663_s8 = sphi %s1763_s8, %s2434_s8   ;;  %s1659_s30 = sphi %s1761_s30, %s2433_s30   ;;  %s1655_s29 = sphi %s1759_s29, %s2432_s29   ;;  %s1651_s28 = sphi %s1757_s28, %s2431_s28   ;;  %s1647_s27 = sphi %s1755_s27, %s2419_s27   ;;  %s1643_s26 = sphi %s1753_s26, %s2430_s26   ;;  %s1639_s25 = sphi %s1751_s25, %s2418_s25   ;;  %s1635_s24 = sphi %s1749_s24, %s2417_s24  }
  0x19   : > { %2348 = sst [smem:[#allocation17_spill]] %s1639_s25  ;;  %s46_s19 = sadd.s32 1, %s1695_s16 }
  0x1a   : > { %2349 = sst [smem:[#allocation18_spill]] %s1643_s26  ;;  %p44_p0 = scmp.ge.s32.totalorder %s42_s18, 4 }
  0x1b   : > { %2350 = sst [smem:[#allocation19_spill]] %s1647_s27  ;;  %p2323_p1 = scmp.eq.s32.totalorder %s1699_s17, 0 }
  0x1c   : > { %2351 = sst [smem:[#allocation20_spill]] %s1651_s28  ;;  %s1838_s20 = smul.u32 3, %s1691_s15 }
  0x1d   : > { %2352 = sst [smem:[#allocation21_spill]] %s1655_s29  ;;  %s91_s21 = sadd.s32 1, %s1667_s9 }
  0x1e   : > { %2353 = sst [smem:[#allocation22_spill]] %s1667_s9  ;;  %s2441_s18 = smov (%p44_p0, %s42_s18), 0 }
  0x1f   : > { %2354 = sst [smem:[#allocation23_spill]] %s1683_s13  ;;  %s2443_s19 = smov (!%p44_p0, %s46_s19), %s1695_s16 }
  0x20   : > { %2355 = sst [smem:[#allocation24_spill]] %s1687_s14  ;;  %s81_s22 = sadd.s32 4, %s1838_s20 }
  0x21   : > { %2356 = sst [smem:[#allocation25_spill]] %s1691_s15  ;;  %s1846_s23 = smul.u32 3, %s2441_s18 }
  0x22   : > { %2357 = sst [smem:[#allocation26_spill]] %s1695_s16  ;;  %p48_p2 = scmp.ge.s32.totalorder %s2443_s19, 2 }
  0x23   : > { %2358 = sst [smem:[#allocation27_spill]] %s2441_s18  ;;  %p98_p3 = scmp.ne.s32.totalorder %s1667_s9, %s1663_s8 }
  0x24   : > { %s83_s7 = sadd.s32 4, %s1846_s23  ;;  %s2445_s19 = smov (%p48_p2, %s2443_s19), 0 }
  0x25   : > { %2359 = sst [smem:[#allocation28_spill]] %s2445_s19  ;;  %s85_s5 = ssub.s32 %s81_s22, %s83_s7 }
  0x26   : > { %p1857_p5 = por %p98_p3, %p2323_p1  ;;  %s1863_s14 = ssub.s32 %s1695_s16, %s2445_s19 }
  0x27   : > { %s115_s6 = sadd.s32 5, %s1838_s20  ;;  %s86_s3 = sor.u32 %s85_s5, %s1863_s14 }
  0x28   : > { %s117_s24 = sadd.s32 5, %s1846_s23  ;;  %p89_p6 = scmp.eq.s32.totalorder %s86_s3, 0 }
  0x29   : > { %s119_s25 = ssub.s32 %s115_s6, %s117_s24  ;;  %p2322_p8 = scmp.lt.s32.totalorder %s1699_s17, 8 }
  0x2a   : > { %s120_s26 = sor.u32 %s119_s25, %s1863_s14  ;;  %s1136_s2 = sshll.u32 %s1695_s16, 5 }
  0x2b   : > { %s1870_s7 = scalar_select %p89_p6, %s1667_s9, %s91_s21  }
  0x2c   : > { %p1872_p7 = scmp.eq.s32.totalorder %s120_s26, 0  ;;  %s331_s27 = sand.u32 1, %s1699_s17  }
  0x2d   : > { %2361 = sst [smem:[#allocation29_spill]] %s1870_s7  ;;  %s333_s19 = sand.u32 1, %s1667_s9  }
  0x2e   : > { %s1138_s28 = sshll.u32 %s333_s19, 4  ;;  %s1139_s29 = smul.u32 6, %s1691_s15 }
  0x2f   : > { %p1885_p9 = pnand %p2322_p8, %p1857_p5  ;;  %s335_s6 = scalar_lea.vmem [#allocation5], %s1138_s28 }
  0x30   : > { %s979_s3 = sadd.s32 %s1139_s29, %s1136_s2  ;;  %s348_s24 = sshll.u32 %s335_s6, 4  ;;  %s1893_s24 = int_to_ptr.vmem [resolvable:$true] %s348_s24 }
  0x31   : > { %s1891_s25 = sshll.u32 %s979_s3, 7  ;;  %s2364_s1 = sld [smem:[#allocation32_spill]] }
  0x32   : > { %s1901_s7 = scalar_lea.sflag [#allocation6], %s331_s27  ;;  %p1409_p11 = pneg %p1885_p9 }
  0x37   : > { %s981_s13 = scalar_lea.hbm %s2364_s1, %s1891_s25  ;;  %s1412_s3 = scalar_lea.hbm %s2364_s1, 8192 }
  0x38   : > { %s1899_s21 = scalar_lea.hbm %s981_s13, 1024  ;;  %s1437_s9 = scalar_lea.hbm %s981_s13, 1280 }
  0x39   : > { %p1408_p10 = scmp.ne.s32.totalorder %s1899_s21, %s1437_s9  ;;  %p1413_p0 = scmp.lt.u32.totalorder %s1899_s21, %s2364_s1 }
  0x3a   : > { %p1414_p2 = scmp.lt.u32.totalorder %s1412_s3, %s1437_s9  ;;  %p1416_p5 = scmp.lt.u32.totalorder %s1437_s9, %s1899_s21 }
  0x3b   : > { %p1410_p12 = pnand %p1409_p11, %p1408_p10 }
  0x3c   : > { %p1415_p3 = por %p1414_p2, %p1413_p0 }
  0x3d   : > { %p1411_p13 = pneg %p1410_p12 }
  0x3e   : > { %p1417_p6 = por %p1416_p5, %p1415_p3 }
  0x40   : > { %p1418_p8 = pnand %p1417_p6, %p1411_p13 }
  0x42   : > { %1421 = shalt.err (!%p1418_p8)
}
  0x43   : > { %s1422_s27 = scalar_lea.vmem %s1893_s24, 256  ;;  %s1701_s19 = smov [#allocation5]  }
  0x44   : > { %p1423_p10 = scmp.ne.s32.totalorder %s1893_s24, %s1422_s27  ;;  %s1427_s13 = sshll.u32 %s1701_s19, 4  ;;  %s1428_s13 = int_to_ptr.vmem [resolvable:$false] %s1427_s13 }
  0x45   : > { %s1429_s28 = scalar_lea.vmem %s1428_s13, 512  ;;  %p1430_p4 = scmp.lt.s32.totalorder %s1893_s24, %s1428_s13 }
  0x46   : > { %p1425_p12 = pnand %p1423_p10, %p1409_p11  ;;  %p1431_p0 = scmp.lt.s32.totalorder %s1429_s28, %s1422_s27 }
  0x48   : > { %p1426_p1 = pneg %p1425_p12  ;;  %p1432_p2 = por %p1431_p0, %p1430_p4 }
  0x4a   : > { %p1433_p3 = pnand %p1432_p2, %p1426_p1 }
  0x4c   : > { %1436 = shalt.err (!%p1433_p3)
}
  0x4d   : > { %s2325_s9 = smov 128   ;;  %s2327_s29 = smov 8  }
  0x4e   : > { %1257 = dma.hbm_to_vmem [thread:$0]  (!%p1885_p9), %s1899_s21, 256, %s1893_s24, %s1901_s7, %s2325_s9, %s2325_s9, %s2327_s29  }
  0x4f   : > { %s2324_s3 = sadd.s32 4294967295, %s1699_s17   ;;  %p1131_p4 = scmp.ge.s32.totalorder %s1699_s17, 1 }
  0x50   : > { %p1934_p1 = scmp.eq.s32.totalorder %s2324_s3, 0  ;;  %p276_p8 = scmp.lt.s32.totalorder %s1699_s17, 9 }
  0x51   : > { %p2366_p11 = scmp.ne.s32.totalorder %s1663_s8, %s1659_s30  ;;  %s2368_s4 = sld [smem:[#allocation35_spill]] }
  0x52   : > { %s2365_s6 = scalar_select %p1934_p1, 1, 0 }
  0x53   : > { %p1945_p13 = por %p2366_p11, %p1934_p1  ;;  %p1952_p9 = pnand %p1131_p4, %p276_p8 }
  0x54   : > { %s51_s30 = ssub.s32 %s1691_s15, %s2441_s18 }
  0x55   : > { %s2367_s26 = scalar_select %p1945_p13, 1, 0 }
  0x56   : > { %s2369_s21 = scalar_select %p1952_p9, 1, 0 }
  0x57   : > { %s289_s24 = sshll.u32 %s2368_s4, 4  ;;  %p1247_p5 = pneg %p1952_p9  ;;  %s290_s24 = int_to_ptr.vmem [resolvable:$true] %s289_s24 }
  0x58   : > { %s52_s13 = sor.u32 %s51_s30, %s1863_s14  ;;  %s1438_s28 = scalar_lea.vmem %s290_s24, 16 }
  0x59   : > { %p1960_p6 = pnand %p1247_p5, %p1934_p1  ;;  %p1439_p10 = scmp.ne.s32.totalorder %s290_s24, %s1438_s28 }
  0x5a   : > { %p1446_p3 = scmp.lt.s32.totalorder %s290_s24, %s290_s24  ;;  %p1447_p4 = scmp.lt.s32.totalorder %s1438_s28, %s1438_s28 }
  0x5b   : > { %p1440_p12 = pneg %p1960_p6 }
  0x5c   : > { %p1448_p8 = por %p1447_p4, %p1446_p3 }
  0x5d   : > { %p1441_p0 = pnand %p1440_p12, %p1439_p10 }
  0x5f   : > { %p1442_p2 = pneg %p1441_p0 }
  0x61   : > { %p1449_p11 = pnand %p1448_p8, %p1442_p2 }
  0x63   : > { %1452 = shalt.err (!%p1449_p11)
}
  0x64   : > { %s1704_s5 = smov [#allocation10]   ;;  %p55_p5 = scmp.eq.s32.totalorder %s52_s13, 0 }
  0x65   : > { %1250 = dma.vmem_to_smem (!%p1960_p6), %s290_s24, 16, %s1704_s5, [#allocation4]  }
  0x66   : > { %s57_s27 = sadd.s32 1, %s1679_s12  ;;  %p64_p10 = scmp.ne.s32.totalorder %s1679_s12, %s1675_s11 }
  0x67   : > { %p70_p12 = scmp.ne.s32.totalorder %s1675_s11, %s1671_s10  ;;  %p2372_p0 = scmp.eq.s32.totalorder %s1699_s17, 0 }
  0x68   : > { %s1977_s30 = scalar_select %p55_p5, %s1679_s12, %s57_s27  }
  0x69   : > { %p66_p2 = por %p2372_p0, %p64_p10  ;;  %p1983_p3 = por %p1934_p1, %p70_p12 }
  0x6a   : > { %2371 = sst [smem:[#allocation30_spill]] %s1977_s30  ;;  %s306_s28 = sand.u32 1, %s1679_s12  }
  0x6b   : > { %s2373_s19 = scalar_select %p1983_p3, 1, 0 }
  0x6c   : > { %s1135_s3 = sshll.u32 %s1691_s15, 1  ;;  %s1134_s9 = sshll.u32 %s306_s28, 4 }
  0x6d   : > { %s318_s29 = sadd.s32 %s1136_s2, %s1135_s3  ;;  %s310_s13 = scalar_lea.vmem [#allocation2], %s1134_s9 }
  0x6e   : > { %s1137_s24 = sshll.u32 %s318_s29, 7  ;;  %s321_s5 = sshll.u32 %s310_s13, 4  ;;  %s1996_s5 = int_to_ptr.vmem [resolvable:$true] %s321_s5 }
  0x6f   : > { %s2374_s0 = sld [smem:[#allocation31_spill]]  ;;  %p2375_p6 = scmp.lt.s32.totalorder %s1699_s17, 8 }
  0x70   : > { %s2004_s2 = scalar_lea.sflag [#allocation3], %s306_s28 }
  0x71   : > { %p2000_p4 = pnand %p2375_p6, %p66_p2 }
  0x73   : > { %p1455_p11 = pneg %p2000_p4 }
  0x75   : > { %s1994_s10 = scalar_lea.hbm %s2374_s0, %s1137_s24  ;;  %s1458_s29 = scalar_lea.hbm %s2374_s0, 8192 }
  0x76   : > { %s1453_s9 = scalar_lea.hbm %s1994_s10, 256  ;;  %p1459_p12 = scmp.lt.u32.totalorder %s1994_s10, %s2374_s0 }
  0x77   : > { %p1454_p8 = scmp.ne.s32.totalorder %s1994_s10, %s1453_s9  ;;  %p1460_p0 = scmp.lt.u32.totalorder %s1458_s29, %s1453_s9 }
  0x78   : > { %p1462_p6 = scmp.lt.u32.totalorder %s1453_s9, %s1994_s10 }
  0x79   : > { %p1456_p5 = pnand %p1455_p11, %p1454_p8  ;;  %p1461_p2 = por %p1460_p0, %p1459_p12 }
  0x7b   : > { %p1457_p10 = pneg %p1456_p5  ;;  %p1463_p13 = por %p1462_p6, %p1461_p2 }
  0x7d   : > { %p1464_p3 = pnand %p1463_p13, %p1457_p10 }
  0x7f   : > { %1467 = shalt.err (!%p1464_p3)
}
  0x80   : > { %s1468_s28 = scalar_lea.vmem %s1996_s5, 256  ;;  %s1705_s13 = smov [#allocation2]  }
  0x81   : > { %p1469_p8 = scmp.ne.s32.totalorder %s1996_s5, %s1468_s28  ;;  %s1473_s1 = sshll.u32 %s1705_s13, 4  ;;  %s1474_s1 = int_to_ptr.vmem [resolvable:$false] %s1473_s1 }
  0x82   : > { %s1475_s4 = scalar_lea.vmem %s1474_s1, 512  ;;  %p1476_p1 = scmp.lt.s32.totalorder %s1996_s5, %s1474_s1 }
  0x83   : > { %p1471_p5 = pnand %p1469_p8, %p1455_p11  ;;  %p1477_p12 = scmp.lt.s32.totalorder %s1475_s4, %s1468_s28 }
  0x85   : > { %p1472_p9 = pneg %p1471_p5  ;;  %p1478_p0 = por %p1477_p12, %p1476_p1 }
  0x87   : > { %p1479_p2 = pnand %p1478_p0, %p1472_p9 }
  0x89   : > { %1482 = shalt.err (!%p1479_p2)
}
  0x8a   : > { %s2377_s9 = smov 8   ;;  %s2378_s29 = smov 128  }
  0x8b   : > { %s2379_s3 = sld [smem:[#allocation21_spill]]  ;;  %s2380_s24 = sld [smem:[#allocation20_spill]] }
  0x8c   : > { %s2381_s13 = sld [smem:[#allocation19_spill]]  ;;  %p2382_p13 = scmp.eq.s32.totalorder %s1699_s17, 0 }
  0x8d   : > { %1254 = dma.hbm_to_vmem [thread:$0]  (!%p2000_p4), %s1994_s10, 256, %s1996_s5, %s2004_s2, %s2378_s29, %s2378_s29, %s2377_s9  }
  0x8e   : > { %s2383_s18 = sld [smem:[#allocation33_spill]]  ;;  %p2384_p11 = scmp.ne.s32.totalorder %s2365_s6, 0 }
  0x91   : > { %s125_s27 = sadd.s32 1, %s2379_s3  ;;  %p132_p1 = scmp.ne.s32.totalorder %s2379_s3, %s2380_s24 }
  0x92   : > { %s2041_s28 = scalar_select %p1872_p7, %s2379_s3, %s125_s27  }
  0x93   : > { %p134_p9 = por %p132_p1, %p2382_p13  ;;  %p138_p3 = scmp.ne.s32.totalorder %s2380_s24, %s2381_s13 }
  0x94   : > { %s360_s1 = sand.u32 1, %s2379_s3   ;;  %s993_s16 = scalar_lea.hbm %s2383_s18, %s1891_s25 }
  0x95   : > { %p2054_p10 = por %p138_p3, %p2384_p11  ;;  %s1142_s30 = sshll.u32 %s360_s1, 4 }
  0x96   : > { %s2058_s5 = scalar_lea.hbm %s993_s16, 1280  ;;  %s362_s22 = scalar_lea.vmem [#allocation7], %s1142_s30 }
  0x97   : > { %s2385_s15 = scalar_select %p2054_p10, 1, 0 }
  0x98   : > { %s375_s10 = sshll.u32 %s362_s22, 4  ;;  %p2386_p7 = scmp.lt.s32.totalorder %s1699_s17, 8  ;;  %s2066_s10 = int_to_ptr.vmem [resolvable:$true] %s375_s10 }
  0x99   : > { %s1513_s0 = scalar_lea.hbm %s993_s16, 1536  ;;  %s1488_s24 = scalar_lea.hbm %s2383_s18, 8192 }
  0x9a   : > { %p2062_p4 = pnand %p2386_p7, %p134_p9  ;;  %p1484_p6 = scmp.ne.s32.totalorder %s2058_s5, %s1513_s0 }
  0x9b   : > { %p1489_p0 = scmp.lt.u32.totalorder %s2058_s5, %s2383_s18  ;;  %p1490_p2 = scmp.lt.u32.totalorder %s1488_s24, %s1513_s0 }
  0x9c   : > { %p1485_p8 = pneg %p2062_p4  ;;  %p1492_p13 = scmp.lt.u32.totalorder %s1513_s0, %s2058_s5 }
  0x9d   : > { %p1491_p1 = por %p1490_p2, %p1489_p0 }
  0x9e   : > { %p1486_p5 = pnand %p1485_p8, %p1484_p6 }
  0x9f   : > { %p1493_p9 = por %p1492_p13, %p1491_p1 }
  0xa0   : > { %p1487_p12 = pneg %p1486_p5 }
  0xa2   : > { %p1494_p3 = pnand %p1493_p9, %p1487_p12 }
  0xa4   : > { %1497 = shalt.err (!%p1494_p3)
}
  0xa5   : > { %s1498_s16 = scalar_lea.vmem %s2066_s10, 256  ;;  %s1706_s1 = smov [#allocation7]  }
  0xa6   : > { %p1499_p7 = scmp.ne.s32.totalorder %s2066_s10, %s1498_s16  ;;  %s1503_s4 = sshll.u32 %s1706_s1, 4  ;;  %s1504_s4 = int_to_ptr.vmem [resolvable:$false] %s1503_s4 }
  0xa7   : > { %s1505_s22 = scalar_lea.vmem %s1504_s4, 512  ;;  %p1506_p10 = scmp.lt.s32.totalorder %s2066_s10, %s1504_s4 }
  0xa8   : > { %p1501_p6 = pnand %p1499_p7, %p1485_p8  ;;  %p1507_p0 = scmp.lt.s32.totalorder %s1505_s22, %s1498_s16 }
  0xaa   : > { %p1502_p5 = pneg %p1501_p6  ;;  %p1508_p2 = por %p1507_p0, %p1506_p10 }
  0xac   : > { %p1509_p1 = pnand %p1508_p2, %p1502_p5 }
  0xae   : > { %1512 = shalt.err (!%p1509_p1)
}
  0xaf   : > { %s2388_s0 = sld [smem:[#allocation18_spill]]  ;;  %s2389_s3 = sld [smem:[#allocation17_spill]] }
  0xb0   : > { %s2390_s30 = sld [smem:[#allocation16_spill]]  ;;  %s149_s2 = sadd.s32 6, %s1838_s20 }
  0xb1   : > { %1260 = dma.hbm_to_vmem [thread:$0]  (!%p2062_p4), %s2058_s5, 256, %s2066_s10, %s1901_s7, %s2378_s29, %s2378_s29, %s2377_s9  }
  0xb2   : > { %s151_s24 = sadd.s32 6, %s1846_s23  ;;  %p2391_p13 = scmp.eq.s32.totalorder %s1699_s17, 0 }
  0xb3   : > { %s153_s13 = ssub.s32 %s149_s2, %s151_s24  ;;  %s2393_s5 = sld [smem:[#allocation34_spill]] }
  0xb4   : > { %s154_s16 = sor.u32 %s153_s13, %s1863_s14  ;;  %p2394_p4 = scmp.lt.s32.totalorder %s1699_s17, 8 }
  0xb5   : > { %s159_s27 = sadd.s32 1, %s2388_s0  ;;  %p166_p10 = scmp.ne.s32.totalorder %s2388_s0, %s2389_s3 }
  0xb6   : > { %p157_p8 = scmp.eq.s32.totalorder %s154_s16, 0  ;;  %p172_p12 = scmp.ne.s32.totalorder %s2389_s3, %s2390_s30 }
  0xb7   : > { %p168_p9 = por %p166_p10, %p2391_p13  ;;  %s385_s1 = sand.u32 1, %s2388_s0  }
  0xb8   : > { %s2447_s0 = smov (!%p157_p8, %s2388_s0), %s159_s27  ;;  %p2112_p3 = por %p172_p12, %p2384_p11 }
  0xb9   : > { %s1146_s7 = sshll.u32 %s385_s1, 4  ;;  %s1005_s10 = scalar_lea.hbm %s2393_s5, %s1891_s25 }
  0xba   : > { %s2120_s22 = scalar_lea.hbm %s1005_s10, 1536  ;;  %s389_s14 = scalar_lea.vmem [#allocation8], %s1146_s7 }
  0xbb   : > { %s402_s3 = sshll.u32 %s389_s14, 4  ;;  %p2124_p7 = pnand %p2394_p4, %p168_p9  ;;  %s2128_s3 = int_to_ptr.vmem [resolvable:$true] %s402_s3 }
  0xbc   : > { %s2130_s2 = scalar_lea.sflag [#allocation9], %s385_s1  ;;  %s1544_s24 = scalar_lea.hbm %s1005_s10, 1792 }
  0xbd   : > { %p1515_p11 = scmp.ne.s32.totalorder %s2120_s22, %s1544_s24  ;;  %p1516_p6 = pneg %p2124_p7 }
  0xbe   : > { %s1519_s27 = scalar_lea.hbm %s2393_s5, 8192  ;;  %p1520_p2 = scmp.lt.u32.totalorder %s2120_s22, %s2393_s5 }
  0xbf   : > { %p1517_p5 = pnand %p1516_p6, %p1515_p11  ;;  %p1521_p1 = scmp.lt.u32.totalorder %s1519_s27, %s1544_s24 }
  0xc0   : > { %p1523_p8 = scmp.lt.u32.totalorder %s1544_s24, %s2120_s22 }
  0xc1   : > { %p1518_p0 = pneg %p1517_p5  ;;  %p1522_p10 = por %p1521_p1, %p1520_p2 }
  0xc3   : > { %p1524_p12 = por %p1523_p8, %p1522_p10 }
  0xc5   : > { %p1525_p13 = pnand %p1524_p12, %p1518_p0 }
  0xc7   : > { %1528 = shalt.err (!%p1525_p13)
}
  0xc8   : > { %s1529_s1 = scalar_lea.vmem %s2128_s3, 256  ;;  %s1707_s20 = smov [#allocation8]  }
  0xc9   : > { %p1530_p9 = scmp.ne.s32.totalorder %s2128_s3, %s1529_s1  ;;  %s1534_s23 = sshll.u32 %s1707_s20, 4  ;;  %s1535_s23 = int_to_ptr.vmem [resolvable:$false] %s1534_s23 }
  0xca   : > { %s1536_s10 = scalar_lea.vmem %s1535_s23, 512  ;;  %p1537_p5 = scmp.lt.s32.totalorder %s2128_s3, %s1535_s23 }
  0xcb   : > { %p1532_p4 = pnand %p1530_p9, %p1516_p6  ;;  %p1538_p2 = scmp.lt.s32.totalorder %s1536_s10, %s1529_s1 }
  0xcd   : > { %p1533_p11 = pneg %p1532_p4  ;;  %p1539_p1 = por %p1538_p2, %p1537_p5 }
  0xcf   : > { %p1540_p10 = pnand %p1539_p1, %p1533_p11 }
  0xd1   : > { %1543 = shalt.err (!%p1540_p10)
}
  0xd2   : > { %1263 = dma.hbm_to_vmem [thread:$0]  (!%p2124_p7), %s2120_s22, 256, %s2128_s3, %s2130_s2, %s2378_s29, %s2378_s29, %s2377_s9  }
  0xd3   : > { %p2396_p6 = scmp.ne.s32.totalorder %s2369_s21, 0 }
  0xd4   : > { %s416_s14 = sand.u32 (!%p2396_p6), 1, %s1675_s11   ;;  %p2397_p0 = scmp.ne.s32.totalorder (!%p2396_p6), %s2373_s19, 0 }
  0xd5   : > { %414 = sbr.rel (%p2396_p6) target bundleno = 616 (0x268), region = 48  ;;  %s2163_s24 = sshll.u32 (!%p2396_p6), %s416_s14, 4 }
  0xd6   : > { %s417_s25 = scalar_lea.sflag (!%p2396_p6), [#allocation3], %s416_s14 }
  0xdc   : > { %1614 = dma.done.wait (%p2397_p0), %s417_s25, 256  }
  0xdd   : > { %1616 = vsyncadd (%p2397_p0), %s417_s25, 4294967040  ;;  %s2398_s30 = sadd.s32 4294967295, %s1699_s17   ;;  %s427_s21 = sand.u32 1, %s1663_s8  }
  0xde   : > { %s425_s9 = sand.u32 1, %s2398_s30   ;;  %s2173_s29 = sshll.u32 %s427_s21, 4 }
  0xdf   : > { %s426_s22 = scalar_lea.sflag [#allocation6], %s425_s9  ;;  %p2399_p7 = scmp.ne.s32.totalorder %s2367_s26, 0 }
  0xe1   : > { %1618 = dma.done.wait (%p2399_p7), %s426_s22, 256  }
  0xe2   : > { %1620 = vsyncadd (%p2399_p7), %s426_s22, 4294967040  ;;  %s2400_s2 = sld [smem:[#allocation20_spill]]  ;;  %p2401_p8 = scmp.ne.s32.totalorder %s2385_s15, 0 }
  0xe8   : > { %s436_s19 = sand.u32 1, %s2400_s2  }
  0xe9   : > { %s2181_s27 = sshll.u32 %s436_s19, 4 }
  0xea   : > { %s438_s16 = scalar_lea.vmem [#allocation7], %s2181_s27 }
  0xeb   : > { %1622 = dma.done.wait (%p2401_p8), %s426_s22, 256  }
  0xec   : > { %1624 = vsyncadd (%p2401_p8), %s426_s22, 4294967040  ;;  %s2402_s7 = sld [smem:[#allocation17_spill]] }
  0xf2   : > { %s443_s1 = sand.u32 1, %s2402_s7  }
  0xf3   : > { %s2189_s20 = sshll.u32 %s443_s1, 4  ;;  %s444_s26 = scalar_lea.sflag [#allocation9], %s443_s1 }
  0xf4   : > { %s447_s23 = scalar_lea.vmem [#allocation8], %s2189_s20 }
  0xf5   : > { %1626 = dma.done.wait (%p2112_p3), %s444_s26, 256  }
  0xf6   : > { %1628 = vsyncadd (%p2112_p3), %s444_s26, 4294967040  ;;  %p2403_p12 = scmp.ne.s32.totalorder %s2365_s6, 0 }
  0xf8   : > { %1630 = dma.done.wait (%p2403_p12), [#allocation4], 16  }
  0xf9   : > { %1632 = vsyncadd (%p2403_p12), [#allocation4], 4294967280 }
  0xfa   : > { %456 = sfence }
  0xfb   : > { %s2404_s14 = sld [smem:[#allocation37_spill]]  ;;  %s2407_s30 = sld [smem:[#allocation23_spill]]  ;;  %v550_v6 = vld [vmem:[%s438_s16] sm:$0xff]  ;;  %v551_v7 = vld [vmem:[%s438_s16 + $0x8] sm:$0xff]  ;;  %vm572_vm0 = vcmask 130048   ;;  %vm897_vm1 = vcmask 261120  }
  0xfc   : > { %s2406_s25 = sld [smem:[#allocation24_spill]]  ;;  %s2408_s26 = sld [smem:[#allocation36_spill]]  ;;  %v555_v8 = vld [vmem:[%s447_s23] sm:$0xff]  ;;  %v556_v9 = vld [vmem:[%s447_s23 + $0x8] sm:$0xff]  ;;  %vm908_vm2 = vcmask 523520  }
 0x101   : > { %s2405_s21 = smov %s2404_s14  ;;  %v570_v0 = vld [vmem:[%s2404_s14] sm:$0xff]  ;;  %p519_p13 = scmp.lt.s32.totalorder %s2407_s30, 3 }
 0x102   : > { %v571_v1 = vld [vmem:[%s2405_s21 + $0x8] sm:$0xff]  ;;  %s1159_s2 = sshll.u32 %s2406_s25, 2  ;;  %s2409_s3 = smov %s2408_s26  ;;  %v568_v3 = vld [vmem:[%s2408_s26] sm:$0xff] }
 0x103   : > { %v1215_v2 = vpack.c.bf16 %v571_v1, %v570_v0  ;;  %s531_s4 = sadd.s32 %s2407_s30, %s1159_s2  ;;  %v569_v4 = vld [vmem:[%s2409_s3 + $0x8] sm:$0xff]  ;;  %p517_p3 = scmp.lt.s32.totalorder %s2406_s25, 1 }
 0x104   : > { %s1160_s19 = sshll.u32 %s531_s4, 2  ;;  %v1219_v5 = vpack.c.bf16 %v569_v4, %v568_v3  ;;  %s2410_s4 = scalar_lea.vmem [#allocation2], %s2163_s24 }
 0x105   : > { %1224 = vmatprep.subr.bf16.mxu1 %v1215_v2  ;;  %s536_s15 = sadd.s32 2, %s1160_s19  ;;  %s538_s10 = sadd.s32 3, %s1160_s19  ;;  %1216 = vmatprep.subr.bf16.mxu0 %v1215_v2  ;;  %v540_v12 = vld [vmem:[%s2410_s4] sm:$0xff] }
 0x106   : > { %1226 = vmatpush3.bf16.msra.mxu1 %v1215_v2  ;;  %s537_s14 = sld [smem:[#allocation10 + %s536_s15]]  ;;  %1218 = vmatpush3.bf16.msra.mxu0 %v1215_v2  ;;  %s534_s2 = sadd.s32 1, %s1160_s19 }
 0x107   : > { %s539_s9 = sld [smem:[#allocation10 + %s538_s10]]  ;;  %1228 = vmatprep.subr.bf16.mxu1 %v1219_v5  ;;  %1220 = vmatprep.subr.bf16.mxu0 %v1219_v5  ;;  %s2412_s7 = smov %s2410_s4 }
 0x108   : > { %s533_s22 = sld [smem:[#allocation10 + %s1160_s19]]  ;;  %s2411_s19 = scalar_lea.vmem [#allocation5], %s2173_s29  ;;  %v541_v18 = vld [vmem:[%s2412_s7 + $0x8] sm:$0xff] }
 0x109   : > { %s535_s13 = sld [smem:[#allocation10 + %s534_s2]]  ;;  %v545_v17 = vld [vmem:[%s2411_s19] sm:$0xff]  ;;  %s2413_s27 = smov %s2411_s19 }
 0x10a   : > { %v546_v24 = vld [vmem:[%s2413_s27 + $0x8] sm:$0xff]  ;;  %s2449_s25 = smov (!%p517_p3, %s2406_s25), 1  ;;  %s2451_s30 = smov (!%p519_p13, %s2407_s30), 3 }
 0x10b   : > { %s1156_s24 = sshll.u32 %s2451_s30, 1  ;;  %s1157_s29 = sshll.u32 %s2449_s25, 3 }
 0x10c   : > { %v552_v10 = vstv %s537_s14  ;;  %s526_s16 = sadd.s32 %s1157_s29, %s1156_s24  ;;  %s2414_s26 = sld [smem:[#allocation38_spill]] }
 0x10d   : > { %v557_v11 = vstv %s539_s9  ;;  %v553_v13 = vmul.f32 %v552_v10, %v550_v6  ;;  %v554_v14 = vmul.f32 %v552_v10, %v551_v7  ;;  %s1158_s20 = sshll.u32 %s526_s16, 3  ;;  %s1708_s15 = smov 32  }
 0x10e   : > { %v558_v15 = vmul.f32 %v557_v11, %v555_v8  ;;  %v559_v16 = vmul.f32 %v557_v11, %v556_v9  ;;  %v542_v19 = vstv %s533_s22 }
 0x10f   : > { %v547_v20 = vstv %s535_s13  ;;  %v543_v23 = vmul.f32 %v542_v19, %v540_v12  ;;  %v544_v28 = vmul.f32 %v542_v19, %v541_v18 }
 0x110   : > { %v566_v21 = vsub.f32 %v553_v13, %v558_v15  ;;  %v567_v22 = vsub.f32 %v554_v14, %v559_v16  ;;  %v548_v25 = vmul.f32 %v547_v20, %v545_v17  ;;  %v564_v26 = vadd.f32 %v558_v15, %v553_v13 }
 0x111   : > { %v565_v27 = vadd.f32 %v559_v16, %v554_v14  ;;  %v549_v29 = vmul.f32 %v547_v20, %v546_v24 }
 0x112   : > { %1205 = vmatprep.mubr.msk.f32.mxu1 %vm572_vm0, %v566_v21  ;;  %v562_v30 = vsub.f32 %v543_v23, %v548_v25  ;;  %1191 = vmatprep.mubr.msk.f32.mxu0 %vm572_vm0, %v564_v26  ;;  %v560_v31 = vadd.f32 %v548_v25, %v543_v23  ;;  %s528_s6 = scalar_lea.vmem %s2414_s26, %s1158_s20 }
 0x113   : > { %1206 = vmatmul.mubr.msk.f32.vlgmr.msra.gmra.mrb[0].mxu1 %vm572_vm0, %v567_v22  ;;  %1192 = vmatmul.mubr.msk.f32.vlgmr.msra.gmra.mrb[0].mxu0 %vm572_vm0, %v565_v27  ;;  %v563_v32 = vsub.f32 %v544_v28, %v549_v29  ;;  %v561_v33 = vadd.f32 %v549_v29, %v544_v28 }
 0x114   : > { %1230 = vmatpush3.bf16.msra.mxu1 %v1219_v5  ;;  %1212 = vmatprep.mubr.msk.f32.mxu1 %vm572_vm0, %v562_v30 }
 0x115   : > { %1222 = vmatpush3.bf16.msra.mxu0 %v1219_v5  ;;  %1198 = vmatprep.mubr.msk.f32.mxu0 %vm572_vm0, %v560_v31 }
 0x11b   : > { %1213 = vmatmul.mubr.msk.f32.vlgmr.msra.gmra.mrb[0].mxu1 %vm572_vm0, %v563_v32  ;;  %1199 = vmatmul.mubr.msk.f32.vlgmr.msra.gmra.mrb[0].mxu0 %vm572_vm0, %v561_v33 }
 0x1ee   : > { %v1214_v34 = vpop.f32.mrb[0].mxu1  ;;  %v1200_v36 = vpop.f32.mrb[0].mxu0 }
 0x1ef   : > { %v888_v35 = vpop.f32.mrb[1].mxu1  ;;  %899 = vst.msk [vmem:[%s528_s6 + $0x8] sm:$0xff] %vm897_vm1, %v1200_v36  ;;  %v726_v37 = vpop.f32.mrb[1].mxu0 }
 0x1f0   : > { %902 = vrot.lane.b32.xlu0 %v888_v35, %s1708_s15  ;;  %898 = vst.msk [vmem:[%s528_s6] sm:$0xff] %vm897_vm1, %v726_v37 }
 0x1f4   : > { %904 = vrot.lane.b32.xlu0 %v1214_v34, %s1708_s15 }
 0x262   : > { %v903_v38 = vpop.permute.xlu0 %902 }
 0x263   : > { %909 = vst.msk [vmem:[%s528_s6] sm:$0xff] %vm908_vm2, %v903_v38 }
 0x266   : > { %v905_v39 = vpop.permute.xlu0 %904 }
 0x267   : > { %910 = vst.msk [vmem:[%s528_s6 + $0x8] sm:$0xff] %vm908_vm2, %v905_v39 }
 0x268 PF: > { %s27_s17 = sadd.s32 1, %s1699_s17   ;;  %s2417_s24 = sld [smem:[#allocation17_spill]] }
 0x269   : > { %p2246_p9 = scmp.ge.s32.totalorder %s27_s17, 10   ;;  %s2418_s25 = sld [smem:[#allocation18_spill]] }
 0x26a   : > { %s2419_s27 = sld [smem:[#allocation20_spill]]  ;;  %s2420_s10 = sld [smem:[#allocation21_spill]] }
 0x26b   : > { %s2421_s14 = smov %s2041_s28  ;;  %s2422_s9 = sld [smem:[#allocation22_spill]] }
 0x26c   : > { %s2423_s22 = sld [smem:[#allocation29_spill]]  ;;  %s2424_s2 = sld [smem:[#allocation30_spill]] }
 0x26d   : > { %s2425_s13 = sld [smem:[#allocation25_spill]]  ;;  %s2426_s4 = sld [smem:[#allocation26_spill]] }
 0x26e   : > { %s2427_s15 = sld [smem:[#allocation27_spill]]  ;;  %s2428_s16 = sld [smem:[#allocation28_spill]] }
 0x26f   : > { %s2430_s26 = smov %s2447_s0  ;;  %s2432_s29 = smov %s2421_s14 }
 0x270   : > { %s2431_s28 = smov %s2420_s10  ;;  %s2433_s30 = smov %s1663_s8 }
 0x271   : > { %s2434_s8 = smov %s2422_s9  ;;  %s2436_s10 = smov %s1675_s11 }
 0x272   : > { %s2435_s9 = smov %s2423_s22  ;;  %s2437_s11 = smov %s1679_s12 }
 0x273   : > { %s2438_s12 = smov %s2424_s2  ;;  %s2439_s14 = smov %s2426_s4 }
 0x274   :  { %26 = sbr.rel (!%p2246_p9) target bundleno = 24 (0x18), region = 130 }
 0x27b   :  { %949 = vsyncpa [#allocation3], 1 }
 0x27c   :  { %951 = vsyncpa [#allocation3 + $0x1], 1 }
 0x27d   :  { %952 = vsyncpa [#allocation6], 1 }
 0x27e   :  { %954 = vsyncpa [#allocation6 + $0x1], 1 }
 0x27f   :  { %955 = vsyncpa [#allocation9], 1 }
 0x280   :  { %957 = vsyncpa [#allocation9 + $0x1], 1 }
 0x281   :  { %958 = vsyncpa [#allocation4], 1 }
 0x282   :  { %960 = vsyncpa [#allocation4 + $0x1], 1 }

</bundles_post_ra>
